<compile_context>
chip_gen: v7x
topology: tpu7x:2x2x1
jax: 0.10.0
libtpu: 0.0.40
codegen_flags: <defaults>
</compile_context>

<pallas_src>
import numpy as np
import jax
import jax.numpy as jnp
from jax.experimental import pallas as pl
from jax.experimental.pallas import tpu as pltpu


# ----------------------------------------------------------------------------
# Deterministic joint map (SMPL-H 52 joints + 21 extra vertex joints -> BODY_25)
# ----------------------------------------------------------------------------
def smplh_to_openpose_body25():
    return np.array([52, 12, 17, 19, 21, 16, 18, 20, 0, 2, 5, 8, 1, 4, 7,
                     53, 54, 55, 56, 57, 58, 59, 60, 61, 62], dtype=np.int32)


# ----------------------------------------------------------------------------
# Trace-time helpers
# ----------------------------------------------------------------------------
def _coalesce_runs(idxs, C):
    """Merge consecutive source indices into (src_lane_offset, lane_width) runs.

    Output positions are consumed in order, so concatenating the runs along the
    lane axis reproduces index_select exactly.  For BODY_25: 25 -> 16 runs.
    """
    runs = []
    n = len(idxs)
    start = 0
    for i in range(1, n + 1):
        if i == n or int(idxs[i]) != int(idxs[i - 1]) + 1:
            cnt = i - start
            runs.append((int(idxs[start]) * C, cnt * C))
            start = i
    assert sum(w for _, w in runs) == n * C
    return tuple(runs)


def _make_gather_kernel(runs):
    def kernel(joints_ref, out_ref):
        # joints_ref: (Bt, J*C)   out_ref: (Bt, M*C) -- lane-dense slabs.
        # Static coalesced gather: load once, slice runs in registers, and
        # write the whole output tile with a single full-width store.
        x = joints_ref[...]
        pieces = [x[:, s:s + w] for (s, w) in runs]
        out_ref[...] = pieces[0] if len(pieces) == 1 else jnp.concatenate(pieces, axis=-1)
    return kernel


def _round_up(x, m):
    return ((x + m - 1) // m) * m


def _pick_batch_tile(B):
    """<= 1024 rows/step, multiple of 8, >= 2 grid steps for B > 16 (v7x: 2 TCs)."""
    if B <= 16:
        return B
    return min(1024, _round_up(pl.cdiv(B, 2), 8))


# ----------------------------------------------------------------------------
# Public wrapper (JointMapper.forward equivalent)
# ----------------------------------------------------------------------------
def joint_mapper(joints, joint_maps, *, force_pallas=False, small_batch_threshold=256):
    """Equivalent of JointMapper.forward: index_select along the joint axis.

    joints: (B, J, C) float array.  joint_maps: static 1-D int sequence (M,)
    or None (identity).  Returns (B, M, C).
    """
    if joint_maps is None:
        return joints

    B, J, C = joints.shape
    idxs = np.asarray(joint_maps, dtype=np.int64).reshape(-1)
    if idxs.size == 0:
        return joints[:, :0, :]
    if (idxs < 0).any() or (idxs >= J).any():
        raise ValueError(f"joint_maps entries must lie in [0, {J})")
    M = int(idxs.size)

    # Tiny batches: pallas_call dispatch + one grid step dwarfs <1 KB of work.
    if (not force_pallas) and B < small_batch_threshold:
        return jnp.take(joints, jnp.asarray(idxs, dtype=jnp.int32), axis=1)

    # Lane-dense layout: flatten (J, C) onto the lane dim (free reshape).
    joints_flat = joints.reshape(B, J * C)
    runs = _coalesce_runs(idxs, C)

    Bt = _pick_batch_tile(B)
    grid = (pl.cdiv(B, Bt),)

    out_flat = pl.pallas_call(
        _make_gather_kernel(runs),
        out_shape=jax.ShapeDtypeStruct((B, M * C), joints.dtype),
        grid_spec=pltpu.PrefetchScalarGridSpec(
            num_scalar_prefetch=0,
            grid=grid,
            in_specs=[pl.BlockSpec((Bt, J * C), lambda b: (b, 0))],
            out_specs=pl.BlockSpec((Bt, M * C), lambda b: (b, 0)),
        ),
        compiler_params=pltpu.CompilerParams(
            dimension_semantics=("parallel",),
        ),
    )(joints_flat)

    return out_flat.reshape(B, M, C)


# ----------------------------------------------------------------------------
# Main
# ----------------------------------------------------------------------------
if __name__ == "__main__":
    J = 73   # 52 SMPL-H joints + 21 extra vertex joints (VertexJointSelector output)
    C = 3
    joint_maps = smplh_to_openpose_body25()   # (25,)
    jm_jnp = jnp.asarray(joint_maps)

    # --- Small shape consistent with the module (B=2) --------------------------
    key = jax.random.PRNGKey(0)
    B = 2
    joints = jax.random.normal(key, (B, J, C), dtype=jnp.float32)
    ref = jnp.take(joints, jm_jnp, axis=1)

    # Forced Pallas path (ensures the kernel itself runs even at small B).
    out_small = jax.block_until_ready(joint_mapper(joints, joint_maps, force_pallas=True))
    np.testing.assert_array_equal(np.asarray(out_small), np.asarray(ref))
    assert out_small.shape == (B, int(joint_maps.shape[0]), C)
    assert out_small.dtype == jnp.float32

    # Default size-based dispatch (XLA take for tiny batches).
    out_dispatch = jax.block_until_ready(joint_mapper(joints, joint_maps))
    np.testing.assert_array_equal(np.asarray(out_dispatch), np.asarray(ref))

    # joint_maps=None path: identity passthrough.
    same = joint_mapper(joints, None)
    np.testing.assert_array_equal(np.asarray(same), np.asarray(joints))

    # --- Larger batches: multi-step grid, partial final tile (B % Bt != 0) -----
    for B_big in (1000, 2048):
        jb = jax.random.normal(jax.random.PRNGKey(B_big), (B_big, J, C), dtype=jnp.float32)
        rb = jnp.take(jb, jm_jnp, axis=1)
        ob = jax.block_until_ready(joint_mapper(jb, joint_maps))
        np.testing.assert_array_equal(np.asarray(ob), np.asarray(rb))

    print("KERNEL_OK")
</pallas_src>

<mosaic_0001>
module attributes {stable_mosaic.version = 11 : i64} {
  func.func @kernel(%arg0: i32, %arg1: memref<2x219xf32, #tpu.memory_space<vmem>>, %arg2: memref<2x75xf32, #tpu.memory_space<vmem>>) attributes {dimension_semantics = [#tpu.dimension_semantics<parallel>], iteration_bounds = array<i64: 1>, scalar_prefetch = 0 : i64, scratch_operands = 0 : i64, tpu.core_type = #tpu.core_type<tc>, window_params = [{transform_indices = @transform_0, window_bounds = array<i64: 2, 219>}, {transform_indices = @transform_1, window_bounds = array<i64: 2, 75>}]} {
    %c0 = arith.constant 0 : index
    %c0_0 = arith.constant 0 : index
    %0 = vector.load %arg1[%c0, %c0_0] : memref<2x219xf32, #tpu.memory_space<vmem>>, vector<2x219xf32>
    %1 = vector.extract_strided_slice %0 {offsets = [0, 156], sizes = [2, 3], strides = [1, 1]} : vector<2x219xf32> to vector<2x3xf32>
    %2 = vector.extract_strided_slice %0 {offsets = [0, 36], sizes = [2, 3], strides = [1, 1]} : vector<2x219xf32> to vector<2x3xf32>
    %3 = vector.extract_strided_slice %0 {offsets = [0, 51], sizes = [2, 3], strides = [1, 1]} : vector<2x219xf32> to vector<2x3xf32>
    %4 = vector.extract_strided_slice %0 {offsets = [0, 57], sizes = [2, 3], strides = [1, 1]} : vector<2x219xf32> to vector<2x3xf32>
    %5 = vector.extract_strided_slice %0 {offsets = [0, 63], sizes = [2, 3], strides = [1, 1]} : vector<2x219xf32> to vector<2x3xf32>
    %6 = vector.extract_strided_slice %0 {offsets = [0, 48], sizes = [2, 3], strides = [1, 1]} : vector<2x219xf32> to vector<2x3xf32>
    %7 = vector.extract_strided_slice %0 {offsets = [0, 54], sizes = [2, 3], strides = [1, 1]} : vector<2x219xf32> to vector<2x3xf32>
    %8 = vector.extract_strided_slice %0 {offsets = [0, 60], sizes = [2, 3], strides = [1, 1]} : vector<2x219xf32> to vector<2x3xf32>
    %9 = vector.extract_strided_slice %0 {offsets = [0, 0], sizes = [2, 3], strides = [1, 1]} : vector<2x219xf32> to vector<2x3xf32>
    %10 = vector.extract_strided_slice %0 {offsets = [0, 6], sizes = [2, 3], strides = [1, 1]} : vector<2x219xf32> to vector<2x3xf32>
    %11 = vector.extract_strided_slice %0 {offsets = [0, 15], sizes = [2, 3], strides = [1, 1]} : vector<2x219xf32> to vector<2x3xf32>
    %12 = vector.extract_strided_slice %0 {offsets = [0, 24], sizes = [2, 3], strides = [1, 1]} : vector<2x219xf32> to vector<2x3xf32>
    %13 = vector.extract_strided_slice %0 {offsets = [0, 3], sizes = [2, 3], strides = [1, 1]} : vector<2x219xf32> to vector<2x3xf32>
    %14 = vector.extract_strided_slice %0 {offsets = [0, 12], sizes = [2, 3], strides = [1, 1]} : vector<2x219xf32> to vector<2x3xf32>
    %15 = vector.extract_strided_slice %0 {offsets = [0, 21], sizes = [2, 3], strides = [1, 1]} : vector<2x219xf32> to vector<2x3xf32>
    %16 = vector.extract_strided_slice %0 {offsets = [0, 159], sizes = [2, 30], strides = [1, 1]} : vector<2x219xf32> to vector<2x30xf32>
    %17 = tpu.concatenate %1, %2, %3, %4, %5, %6, %7, %8, %9, %10, %11, %12, %13, %14, %15, %16 in 1 : vector<2x3xf32>, vector<2x3xf32>, vector<2x3xf32>, vector<2x3xf32>, vector<2x3xf32>, vector<2x3xf32>, vector<2x3xf32>, vector<2x3xf32>, vector<2x3xf32>, vector<2x3xf32>, vector<2x3xf32>, vector<2x3xf32>, vector<2x3xf32>, vector<2x3xf32>, vector<2x3xf32>, vector<2x30xf32> -> vector<2x75xf32>
    %c0_1 = arith.constant 0 : index
    %c0_2 = arith.constant 0 : index
    %18 = vector.load %arg2[%c0_1, %c0_2] : memref<2x75xf32, #tpu.memory_space<vmem>>, vector<2x75xf32>
    tpu.vector_store %arg2[%c0_1, %c0_2], %17 {strides = array<i32>} : memref<2x75xf32, #tpu.memory_space<vmem>>, vector<2x75xf32>,
    return
  }
  func.func @transform_0(%arg0: i32) -> (i32, i32) {
    %c0_i32 = arith.constant 0 : i32
    %c0_i32_0 = arith.constant 0 : i32
    return %arg0, %c0_i32 : i32, i32
  }
  func.func @transform_1(%arg0: i32) -> (i32, i32) {
    %c0_i32 = arith.constant 0 : i32
    %c0_i32_0 = arith.constant 0 : i32
    return %arg0, %c0_i32 : i32, i32
  }
}

</mosaic_0001>

<bundles_post_ra>
// kernel: tpu_custom_call.1
= control target key start
LH: loop header
LB: loop body
LE: loop exit
PB: predicated region body
PF: predicated region fallthrough
CT: control target
= control target key end

     0   :  { %6 = vsyncpa [#allocation3], 0  ;;  %s235_s0 = inlined_call_operand.hbm [shape: f32[2,219], index: 0, kind: input, shape index: {}]   ;;  %s236_s1 = inlined_call_operand.hbm [shape: f32[2,75], index: 1, kind: output, shape index: {}]  }
   0x1   :  { %7 = vsyncpa [#allocation4], 0  ;;  %s185_s6 = smov [#allocation2]   ;;  %s137_s10 = scalar_lea.hbm %s235_s0, 64 }
   0x2   :  { %s14_s7 = sshll.u32 %s185_s6, 4  ;;  %p138_p0 = scmp.ne.s32.totalorder %s235_s0, %s137_s10  ;;  %s15_s7 = int_to_ptr.vmem [resolvable:$true] %s14_s7 }
   0x3   :  { %p141_p1 = scmp.lt.u32.totalorder %s137_s10, %s235_s0 }
   0x5   :  { %p143_p2 = pnand %p141_p1, %p138_p0 }
   0x7   :  { %146 = shalt.err (!%p143_p2)
}
   0x8   :  { %s147_s15 = scalar_lea.vmem %s15_s7, 64  ;;  %p152_p4 = scmp.lt.s32.totalorder %s15_s7, %s15_s7 }
   0x9   :  { %p148_p3 = scmp.ne.s32.totalorder %s15_s7, %s147_s15  ;;  %p153_p5 = scmp.lt.s32.totalorder %s147_s15, %s147_s15 }
   0xb   :  { %p154_p6 = por %p153_p5, %p152_p4 }
   0xd   :  { %p155_p7 = pnand %p154_p6, %p148_p3 }
   0xf   :  { %158 = shalt.err (!%p155_p7)
}
  0x10   :  { %17 = dma.hbm_to_vmem [thread:$0]  %s235_s0, 64, %s15_s7, [#allocation3]  }
  0x11   :  { %181 = dma.done.wait [#allocation3], 64  }
  0x12   :  { %182 = vsyncadd [#allocation3], 4294967232  ;;  %v120_v0 = vld.sshfl [vmem:[#allocation2] sm:$0x33 pattern:$0x76325410] }
  0x13   :  { %s186_s18 = smov 95   ;;  %s187_s19 = smov 83   ;;  %v30_v1 = vcombine.high %v120_v0, %v120_v0  ;;  %vm73_vm0 = vcmask 23552   ;;  %vm75_vm1 = vcmask 48128   ;;  %vm77_vm2 = vcmask 72704  }
  0x14   :  { %34 = vrot.lane.b32.xlu0 %v120_v0, %s186_s18  ;;  %37 = vrot.lane.b32.xlu1 %v120_v0, %s187_s19  ;;  %s188_s20 = smov 77   ;;  %s189_s21 = smov 80   ;;  %vm79_vm3 = vcmask 97280   ;;  %vm81_vm4 = vcmask 121856   ;;  %vm83_vm5 = vcmask 146432   ;;  %vm85_vm6 = vcmask 171008  }
  0x15   :  { %s190_s22 = smov 100   ;;  %s191_s23 = smov 92   ;;  %vm87_vm7 = vcmask 195584   ;;  %vm89_vm8 = vcmask 220160   ;;  %vm91_vm9 = vcmask 244736   ;;  %vm93_vm10 = vcmask 269312  }
  0x16   :  { %s192_s24 = smov 89   ;;  %s193_s25 = smov 24   ;;  %vm95_vm11 = vcmask 293888   ;;  %vm97_vm12 = vcmask 318464   ;;  %vm99_vm13 = vcmask 343040   ;;  %vm101_vm14 = vcmask 367616  }
  0x17   :  { %s194_s0 = smov 21   ;;  %s195_s26 = smov 15   ;;  %vm103_vm15 = vcmask 607232  }
  0x18   :  { %43 = vrot.lane.b32.xlu0 %v120_v0, %s188_s20  ;;  %40 = vrot.lane.b32.xlu1 %v120_v0, %s189_s21  ;;  %s196_s27 = smov 9   ;;  %s197_s28 = smov 33  }
  0x19   :  { %s198_s29 = smov 27   ;;  %s199_s30 = smov 14  }
  0x1a   :  { %s200_s2 = smov [#allocation5]  }
  0x1b   :  { %s111_s3 = sshll.u32 %s200_s2, 4  ;;  %s112_s3 = int_to_ptr.vmem [resolvable:$true] %s111_s3 }
  0x1c   :  { %31 = vrot.lane.b32.xlu0 %v30_v1, %s190_s22  ;;  %46 = vrot.lane.b32.xlu1 %v120_v0, %s191_s23  ;;  %s159_s4 = scalar_lea.vmem %s112_s3, 32  ;;  %p164_p9 = scmp.lt.s32.totalorder %s112_s3, %s112_s3 }
  0x1d   :  { %p160_p8 = scmp.ne.s32.totalorder %s112_s3, %s159_s4  ;;  %p165_p10 = scmp.lt.s32.totalorder %s159_s4, %s159_s4 }
  0x1f   :  { %p166_p11 = por %p165_p10, %p164_p9 }
  0x20   :  { %49 = vrot.lane.b32.xlu0 %v120_v0, %s192_s24  ;;  %52 = vrot.lane.b32.xlu1 %v120_v0, %s193_s25 }
  0x21   :  { %p167_p12 = pnand %p166_p11, %p160_p8 }
  0x24   :  { %55 = vrot.lane.b32.xlu0 %v120_v0, %s194_s0  ;;  %58 = vrot.lane.b32.xlu1 %v120_v0, %s195_s26 }
  0x28   :  { %61 = vrot.lane.b32.xlu0 %v120_v0, %s196_s27  ;;  %64 = vrot.lane.b32.xlu1 %v120_v0, %s197_s28 }
  0x2c   :  { %67 = vrot.lane.b32.xlu0 %v120_v0, %s198_s29  ;;  %70 = vrot.lane.b32.xlu1 %v30_v1, %s199_s30 }
  0x86   :  { %v35_v2 = vpop.permute.xlu0 %34  ;;  %v38_v3 = vpop.permute.xlu1 %37 }
  0x8a   :  { %v44_v4 = vpop.permute.xlu0 %43  ;;  %v41_v5 = vpop.permute.xlu1 %40 }
  0x8e   :  { %v32_v6 = vpop.permute.xlu0 %31  ;;  %v47_v7 = vpop.permute.xlu1 %46 }
  0x8f   :  { %v74_v8 = vsel %vm73_vm0, %v32_v6, %v35_v2 }
  0x90   :  { %v76_v9 = vsel %vm75_vm1, %v74_v8, %v38_v3 }
  0x91   :  { %v78_v10 = vsel %vm77_vm2, %v76_v9, %v41_v5 }
  0x92   :  { %v80_v11 = vsel %vm79_vm3, %v78_v10, %v44_v4  ;;  %v50_v12 = vpop.permute.xlu0 %49  ;;  %v53_v13 = vpop.permute.xlu1 %52 }
  0x93   :  { %v82_v14 = vsel %vm81_vm4, %v80_v11, %v35_v2 }
  0x94   :  { %v84_v15 = vsel %vm83_vm5, %v82_v14, %v47_v7 }
  0x95   :  { %v86_v16 = vsel %vm85_vm6, %v84_v15, %v50_v12 }
  0x96   :  { %v88_v17 = vsel %vm87_vm7, %v86_v16, %v53_v13  ;;  %v56_v18 = vpop.permute.xlu0 %55  ;;  %v59_v19 = vpop.permute.xlu1 %58 }
  0x97   :  { %v90_v20 = vsel %vm89_vm8, %v88_v17, %v56_v18 }
  0x98   :  { %v92_v21 = vsel %vm91_vm9, %v90_v20, %v59_v19 }
  0x9a   :  { %v62_v22 = vpop.permute.xlu0 %61  ;;  %v65_v23 = vpop.permute.xlu1 %64 }
  0x9b   :  { %v94_v24 = vsel %vm93_vm10, %v92_v21, %v62_v22 }
  0x9c   :  { %v96_v25 = vsel %vm95_vm11, %v94_v24, %v65_v23 }
  0x9e   :  { %v68_v26 = vpop.permute.xlu0 %67  ;;  %v71_v27 = vpop.permute.xlu1 %70 }
  0x9f   :  { %v98_v28 = vsel %vm97_vm12, %v96_v25, %v68_v26 }
  0xa0   :  { %v100_v29 = vsel %vm99_vm13, %v98_v28, %v56_v18 }
  0xa1   :  { %v102_v30 = vsel %vm101_vm14, %v100_v29, %v71_v27 }
  0xa2   :  { %104 = vst.msk [vmem:[#allocation5] sm:$0x3] %vm103_vm15, %v102_v30 }
  0xa3   :  { %170 = shalt.err (!%p167_p12)
}
  0xa4   :  { %s171_s7 = scalar_lea.hbm %s236_s1, 32 }
  0xa5   :  { %p172_p13 = scmp.ne.s32.totalorder %s236_s1, %s171_s7  ;;  %p175_p0 = scmp.lt.u32.totalorder %s171_s7, %s236_s1 }
  0xa7   :  { %p177_p1 = pnand %p175_p0, %p172_p13 }
  0xa9   :  { %180 = shalt.err (!%p177_p1)
}
  0xaa   :  { %114 = dma.vmem_to_hbm [thread:$0]  %s112_s3, 32, %s236_s1, [#allocation4]  }
  0xab   :  { %183 = dma.done.wait [#allocation4], 32  }
  0xac   :  { %184 = vsyncadd [#allocation4], 4294967264 }
  0xad   :  { %118 = vsyncpa [#allocation3], 1 }
  0xae   :  { %119 = vsyncpa [#allocation4], 1 }

</bundles_post_ra>
